<compile_context>
chip_gen: v7x
topology: tpu7x:2x2x1
jax: 0.10.0
libtpu: 0.0.40
codegen_flags: <defaults>
</compile_context>

<pallas_src>
from functools import partial

import jax
import jax.numpy as jnp
from jax.experimental import pallas as pl
from jax.experimental.pallas import tpu as pltpu


def _identity_copy_kernel(x_ref, o_ref):
    # Pure pass-through of one lane-dense VMEM tile.
    o_ref[...] = x_ref[...]


def _choose_2d_layout(total_elems: int):
    """Pick a lane-dense (rows, lanes) factorization of the flattened array."""
    for lanes in (4096, 2048, 1024, 512, 256, 128):
        if total_elems % lanes == 0:
            return total_elems // lanes, lanes
    # Tiny / odd sizes: single row, full-extent block (always legal).
    return 1, total_elems


def _choose_block_rows(rows: int, lanes: int, itemsize: int):
    """Largest legal row-block targeting ~2 MiB per block.

    Legality: second-to-last block dim must be a multiple of 8 or equal the
    full dim; we also require it to divide `rows` exactly.
    """
    target_rows = max(8, (2 * 1024 * 1024) // max(1, lanes * itemsize))
    if rows <= target_rows:
        return rows
    br = (target_rows // 8) * 8
    while br >= 8:
        if rows % br == 0:
            return br
        br -= 8
    return rows


@partial(jax.jit, donate_argnums=(0,))
def _forward_impl(x: jnp.ndarray) -> jnp.ndarray:
    orig_shape = x.shape
    total = x.size
    rows, lanes = _choose_2d_layout(total)
    block_rows = _choose_block_rows(rows, lanes, x.dtype.itemsize)
    grid = (rows // block_rows,)

    x2 = x.reshape(rows, lanes)
    y2 = pl.pallas_call(
        _identity_copy_kernel,
        out_shape=jax.ShapeDtypeStruct((rows, lanes), x.dtype),
        grid_spec=pl.GridSpec(
            grid=grid,
            in_specs=[pl.BlockSpec((block_rows, lanes), lambda i: (i, 0))],
            out_specs=pl.BlockSpec((block_rows, lanes), lambda i: (i, 0)),
        ),
        input_output_aliases={0: 0},
        compiler_params=pltpu.CompilerParams(
            dimension_semantics=("parallel",),
        ),
    )(x2)
    return y2.reshape(orig_shape)


def base_model_forward(x: jnp.ndarray) -> dict:
    """Pallas equivalent of BaseModel.forward (identity placeholder).

    NOTE: the input buffer is donated (aliased into the output) for zero extra
    HBM allocation; do not reuse `x` after calling.
    """
    return {"output": _forward_impl(x)}


class BaseModelPallas:
    """JAX/Pallas mirror of the PyTorch BaseModel (no parameters)."""

    def __init__(self, config: dict):
        self.config = config

    def forward(self, x: jnp.ndarray) -> dict:
        return base_model_forward(x)


if __name__ == "__main__":
    key = jax.random.PRNGKey(0)
    # Small NCHW input consistent with a vision-style wallet-recovery model.
    x = jax.random.normal(key, (2, 4, 16, 16), dtype=jnp.float32)

    # Keep an independent copy of the expected values BEFORE the (donating) call.
    x_expected = jnp.copy(x)
    x_expected.block_until_ready()

    model = BaseModelPallas(config={"name": "base", "hidden": 32})
    out = model.forward(x)
    y = jax.block_until_ready(out["output"])

    # Sanity: identity semantics, exact shape/dtype match.
    assert y.shape == x_expected.shape and y.dtype == x_expected.dtype
    assert bool(jnp.allclose(y, x_expected))
    print("KERNEL_OK")
</pallas_src>

<mosaic_0001>
module attributes {stable_mosaic.version = 11 : i64} {
  func.func @_identity_copy_kernel(%arg0: i32, %arg1: memref<1x2048xf32, #tpu.memory_space<vmem>>, %arg2: memref<1x2048xf32, #tpu.memory_space<vmem>>) attributes {dimension_semantics = [#tpu.dimension_semantics<parallel>], iteration_bounds = array<i64: 1>, scalar_prefetch = 0 : i64, scratch_operands = 0 : i64, tpu.core_type = #tpu.core_type<tc>, window_params = [{transform_indices = @transform_0, window_bounds = array<i64: 1, 2048>}, {transform_indices = @transform_1, window_bounds = array<i64: 1, 2048>}]} {
    %c0 = arith.constant 0 : index
    %c0_0 = arith.constant 0 : index
    %0 = vector.load %arg1[%c0, %c0_0] : memref<1x2048xf32, #tpu.memory_space<vmem>>, vector<1x2048xf32>
    %c0_1 = arith.constant 0 : index
    %c0_2 = arith.constant 0 : index
    %1 = vector.load %arg2[%c0_1, %c0_2] : memref<1x2048xf32, #tpu.memory_space<vmem>>, vector<1x2048xf32>
    tpu.vector_store %arg2[%c0_1, %c0_2], %0 {strides = array<i32>} : memref<1x2048xf32, #tpu.memory_space<vmem>>, vector<1x2048xf32>,
    return
  }
  func.func @transform_0(%arg0: i32) -> (i32, i32) {
    %c0_i32 = arith.constant 0 : i32
    %c0_i32_0 = arith.constant 0 : i32
    return %arg0, %c0_i32 : i32, i32
  }
  func.func @transform_1(%arg0: i32) -> (i32, i32) {
    %c0_i32 = arith.constant 0 : i32
    %c0_i32_0 = arith.constant 0 : i32
    return %arg0, %c0_i32 : i32, i32
  }
}

</mosaic_0001>

<bundles_post_ra>
// kernel: _forward_impl.1
= control target key start
LH: loop header
LB: loop body
LE: loop exit
PB: predicated region body
PF: predicated region fallthrough
CT: control target
= control target key end

     0   :  { %s38_s0 = inlined_call_operand.vmem [shape: f32[1,2048], index: 0, kind: input, shape index: {}, may-alias: {0,1}]   ;;  %s39_s1 = inlined_call_operand.vmem [shape: f32[1,2048], index: 1, kind: output, shape index: {}, may-alias: {0,1}]  }
   0x1   :  { %v8_v0 = vld [vmem:[%s38_s0] sm:$0xff]  ;;  %v9_v1 = vld [vmem:[%s38_s0 + $0x8] sm:$0xff] }
   0x2   :  { %10 = vst [vmem:[%s39_s1] sm:$0xff] %v8_v0  ;;  %11 = vst [vmem:[%s39_s1 + $0x8] sm:$0xff] %v9_v1 }

</bundles_post_ra>
